<compile_context>
chip_gen: v7x
topology: tpu7x:2x2x1
jax: 0.10.0
libtpu: 0.0.40
codegen_flags: <defaults>
</compile_context>

<pallas_src>
import math

import jax
import jax.numpy as jnp
from jax.experimental import pallas as pl
from jax.experimental.pallas import tpu as pltpu


# ----------------------------------------------------------------------------
# Pallas kernel: fused tanh + attention score + softmax(over objects) + rescale
# Signature: (w_ref, h_ref_0..h_ref_{N-1}, out_ref_0..out_ref_{N-1})
# ----------------------------------------------------------------------------
def _spatial_attention_kernel(w_ref, *refs):
    n = len(refs) // 2
    h_refs = refs[:n]
    out_refs = refs[n:]

    H = h_refs[0].shape[-1]
    w = w_ref[...].reshape(1, 1, H)                       # lane-dense weight row

    # Load all per-object hidden states (each (B, 1, H)); reused for the final
    # rescale so tanh / loads are not recomputed.
    hs = [h_refs[i][...] for i in range(n)]

    # score_{b,i} = sum_h tanh(h_i)_{b,0,h} * w_h
    #   VPU multiply + lane reduce; avoids a degenerate (H x 1) MXU matmul.
    scores = [jnp.sum(jnp.tanh(h) * w, axis=-1, keepdims=True) for h in hs]  # n x (B,1,1)

    # Numerically stable softmax over the object axis (unrolled: N is tiny).
    smax = scores[0]
    for s in scores[1:]:
        smax = jnp.maximum(smax, s)                       # (B, 1, 1)
    exps = [jnp.exp(s - smax) for s in scores]            # n x (B, 1, 1)
    denom = exps[0]
    for e in exps[1:]:
        denom = denom + e                                 # (B, 1, 1)
    inv_denom = 1.0 / denom                               # exact divide (tiny)

    # roh_i = h_i * alpha_i   (lane-broadcast scale), lane-dense H=256 stores.
    for out_ref, h, e in zip(out_refs, hs, exps):
        out_ref[...] = h * (e * inv_denom)


# ----------------------------------------------------------------------------
# Wrapper: dict values go straight in as kernel operands; kernel outputs go
# straight back out as dict values (no concat, no slicing).
# ----------------------------------------------------------------------------
def spatial_attention_pallas(h_all_in, weight):
    """h_all_in: dict key -> (B, 1, H) array; weight: (H, 1). Returns same-shaped dict."""
    keys = list(h_all_in)
    if not keys:                       # empty dict -> returned unchanged (as in PyTorch)
        return h_all_in

    hs = [jnp.asarray(h_all_in[k], jnp.float32) for k in keys]
    n = len(keys)
    B, _, H = hs[0].shape
    w_row = jnp.asarray(weight, jnp.float32).reshape(1, H)   # (H, 1) -> lane-dense (1, H)

    vmem_spec = pl.BlockSpec(memory_space=pltpu.MemorySpace.VMEM)
    outs = pl.pallas_call(
        _spatial_attention_kernel,
        out_shape=tuple(jax.ShapeDtypeStruct((B, 1, H), jnp.float32) for _ in range(n)),
        in_specs=[vmem_spec] * (n + 1),
        out_specs=tuple(vmem_spec for _ in range(n)),
    )(w_row, *hs)

    return {k: o for k, o in zip(keys, outs)}


# ----------------------------------------------------------------------------
# Pure-JAX reference (for correctness check)
# ----------------------------------------------------------------------------
def spatial_attention_ref(h_all_in, weight):
    keys = list(h_all_in)
    if not keys:
        return h_all_in
    h_in = jnp.concatenate([h_all_in[k] for k in keys], axis=1)   # (B, N, H)
    m = jnp.tanh(h_in)
    scores = jnp.matmul(m, weight, precision=jax.lax.Precision.HIGHEST)  # (B, N, 1)
    alpha = jax.nn.softmax(scores, axis=1)
    roh = h_in * alpha
    return {k: roh[:, i:i + 1, :] for i, k in enumerate(keys)}


# ----------------------------------------------------------------------------
if __name__ == "__main__":
    # Per-object hidden representation is (2, 1, 256) as in the module docstring.
    B, N_OBJ, H = 2, 5, 256

    key = jax.random.PRNGKey(0)
    kw, *kobj = jax.random.split(key, N_OBJ + 1)

    # kaiming_normal_(weight, a=sqrt(5)) on an (H, 1) tensor:
    #   fan_in = 1, gain = sqrt(2 / (1 + 5))  ->  std = sqrt(1/3)
    weight = jax.random.normal(kw, (H, 1), jnp.float32) * math.sqrt(2.0 / 6.0)

    h_all_in = {
        f"obj_{i}": jax.random.normal(kobj[i], (B, 1, H), jnp.float32)
        for i in range(N_OBJ)
    }

    out = spatial_attention_pallas(h_all_in, weight)
    out = {k: jax.block_until_ready(v) for k, v in out.items()}

    ref = spatial_attention_ref(h_all_in, weight)
    for k in h_all_in:
        assert out[k].shape == (B, 1, H), k
        assert jnp.allclose(out[k], ref[k], atol=1e-5, rtol=1e-4), k

    # Empty-dict path: returned unchanged, no kernel launch.
    assert spatial_attention_pallas({}, weight) == {}

    print("KERNEL_OK")
</pallas_src>

<mosaic_0001>
module attributes {stable_mosaic.version = 11 : i64} {
  func.func @_spatial_attention_kernel(%arg0: memref<1x256xf32, #tpu.memory_space<vmem>>, %arg1: memref<2x1x256xf32, #tpu.memory_space<vmem>>, %arg2: memref<2x1x256xf32, #tpu.memory_space<vmem>>, %arg3: memref<2x1x256xf32, #tpu.memory_space<vmem>>, %arg4: memref<2x1x256xf32, #tpu.memory_space<vmem>>, %arg5: memref<2x1x256xf32, #tpu.memory_space<vmem>>, %arg6: memref<2x1x256xf32, #tpu.memory_space<vmem>>, %arg7: memref<2x1x256xf32, #tpu.memory_space<vmem>>, %arg8: memref<2x1x256xf32, #tpu.memory_space<vmem>>, %arg9: memref<2x1x256xf32, #tpu.memory_space<vmem>>, %arg10: memref<2x1x256xf32, #tpu.memory_space<vmem>>) attributes {dimension_semantics = [], scalar_prefetch = 0 : i64, scratch_operands = 0 : i64, tpu.core_type = #tpu.core_type<tc>} {
    %c0 = arith.constant 0 : index
    %c0_0 = arith.constant 0 : index
    %0 = vector.load %arg0[%c0, %c0_0] : memref<1x256xf32, #tpu.memory_space<vmem>>, vector<1x256xf32>
    %1 = vector.shape_cast %0 : vector<1x256xf32> to vector<1x1x256xf32>
    %c0_1 = arith.constant 0 : index
    %c0_2 = arith.constant 0 : index
    %c0_3 = arith.constant 0 : index
    %2 = vector.load %arg1[%c0_1, %c0_2, %c0_3] : memref<2x1x256xf32, #tpu.memory_space<vmem>>, vector<2x1x256xf32>
    %c0_4 = arith.constant 0 : index
    %c0_5 = arith.constant 0 : index
    %c0_6 = arith.constant 0 : index
    %3 = vector.load %arg2[%c0_4, %c0_5, %c0_6] : memref<2x1x256xf32, #tpu.memory_space<vmem>>, vector<2x1x256xf32>
    %c0_7 = arith.constant 0 : index
    %c0_8 = arith.constant 0 : index
    %c0_9 = arith.constant 0 : index
    %4 = vector.load %arg3[%c0_7, %c0_8, %c0_9] : memref<2x1x256xf32, #tpu.memory_space<vmem>>, vector<2x1x256xf32>
    %c0_10 = arith.constant 0 : index
    %c0_11 = arith.constant 0 : index
    %c0_12 = arith.constant 0 : index
    %5 = vector.load %arg4[%c0_10, %c0_11, %c0_12] : memref<2x1x256xf32, #tpu.memory_space<vmem>>, vector<2x1x256xf32>
    %c0_13 = arith.constant 0 : index
    %c0_14 = arith.constant 0 : index
    %c0_15 = arith.constant 0 : index
    %6 = vector.load %arg5[%c0_13, %c0_14, %c0_15] : memref<2x1x256xf32, #tpu.memory_space<vmem>>, vector<2x1x256xf32>
    %7 = math.tanh %2 : vector<2x1x256xf32>
    %8 = vector.broadcast %1 : vector<1x1x256xf32> to vector<2x1x256xf32>
    %9 = arith.mulf %7, %8 : vector<2x1x256xf32>
    %cst = arith.constant dense<0.000000e+00> : vector<2x1xf32>
    %10 = vector.multi_reduction <add>, %9, %cst [2] : vector<2x1x256xf32> to vector<2x1xf32>
    %11 = vector.shape_cast %10 : vector<2x1xf32> to vector<2x1x1xf32>
    %12 = math.tanh %3 : vector<2x1x256xf32>
    %13 = vector.broadcast %1 : vector<1x1x256xf32> to vector<2x1x256xf32>
    %14 = arith.mulf %12, %13 : vector<2x1x256xf32>
    %cst_16 = arith.constant dense<0.000000e+00> : vector<2x1xf32>
    %15 = vector.multi_reduction <add>, %14, %cst_16 [2] : vector<2x1x256xf32> to vector<2x1xf32>
    %16 = vector.shape_cast %15 : vector<2x1xf32> to vector<2x1x1xf32>
    %17 = math.tanh %4 : vector<2x1x256xf32>
    %18 = vector.broadcast %1 : vector<1x1x256xf32> to vector<2x1x256xf32>
    %19 = arith.mulf %17, %18 : vector<2x1x256xf32>
    %cst_17 = arith.constant dense<0.000000e+00> : vector<2x1xf32>
    %20 = vector.multi_reduction <add>, %19, %cst_17 [2] : vector<2x1x256xf32> to vector<2x1xf32>
    %21 = vector.shape_cast %20 : vector<2x1xf32> to vector<2x1x1xf32>
    %22 = math.tanh %5 : vector<2x1x256xf32>
    %23 = vector.broadcast %1 : vector<1x1x256xf32> to vector<2x1x256xf32>
    %24 = arith.mulf %22, %23 : vector<2x1x256xf32>
    %cst_18 = arith.constant dense<0.000000e+00> : vector<2x1xf32>
    %25 = vector.multi_reduction <add>, %24, %cst_18 [2] : vector<2x1x256xf32> to vector<2x1xf32>
    %26 = vector.shape_cast %25 : vector<2x1xf32> to vector<2x1x1xf32>
    %27 = math.tanh %6 : vector<2x1x256xf32>
    %28 = vector.broadcast %1 : vector<1x1x256xf32> to vector<2x1x256xf32>
    %29 = arith.mulf %27, %28 : vector<2x1x256xf32>
    %cst_19 = arith.constant dense<0.000000e+00> : vector<2x1xf32>
    %30 = vector.multi_reduction <add>, %29, %cst_19 [2] : vector<2x1x256xf32> to vector<2x1xf32>
    %31 = vector.shape_cast %30 : vector<2x1xf32> to vector<2x1x1xf32>
    %32 = arith.maximumf %11, %16 : vector<2x1x1xf32>
    %33 = arith.maximumf %32, %21 : vector<2x1x1xf32>
    %34 = arith.maximumf %33, %26 : vector<2x1x1xf32>
    %35 = arith.maximumf %34, %31 : vector<2x1x1xf32>
    %36 = arith.subf %11, %35 : vector<2x1x1xf32>
    %37 = math.exp %36 : vector<2x1x1xf32>
    %38 = arith.subf %16, %35 : vector<2x1x1xf32>
    %39 = math.exp %38 : vector<2x1x1xf32>
    %40 = arith.subf %21, %35 : vector<2x1x1xf32>
    %41 = math.exp %40 : vector<2x1x1xf32>
    %42 = arith.subf %26, %35 : vector<2x1x1xf32>
    %43 = math.exp %42 : vector<2x1x1xf32>
    %44 = arith.subf %31, %35 : vector<2x1x1xf32>
    %45 = math.exp %44 : vector<2x1x1xf32>
    %46 = arith.addf %37, %39 : vector<2x1x1xf32>
    %47 = arith.addf %46, %41 : vector<2x1x1xf32>
    %48 = arith.addf %47, %43 : vector<2x1x1xf32>
    %49 = arith.addf %48, %45 : vector<2x1x1xf32>
    %cst_20 = arith.constant 1.000000e+00 : f32
    %50 = vector.broadcast %cst_20 : f32 to vector<2x1x1xf32>
    %51 = arith.divf %50, %49 : vector<2x1x1xf32>
    %52 = arith.mulf %37, %51 : vector<2x1x1xf32>
    %53 = vector.broadcast %52 : vector<2x1x1xf32> to vector<2x1x256xf32>
    %54 = arith.mulf %2, %53 : vector<2x1x256xf32>
    %c0_21 = arith.constant 0 : index
    %c0_22 = arith.constant 0 : index
    %c0_23 = arith.constant 0 : index
    %55 = vector.load %arg6[%c0_21, %c0_22, %c0_23] : memref<2x1x256xf32, #tpu.memory_space<vmem>>, vector<2x1x256xf32>
    tpu.vector_store %arg6[%c0_21, %c0_22, %c0_23], %54 {strides = array<i32>} : memref<2x1x256xf32, #tpu.memory_space<vmem>>, vector<2x1x256xf32>,
    %56 = arith.mulf %39, %51 : vector<2x1x1xf32>
    %57 = vector.broadcast %56 : vector<2x1x1xf32> to vector<2x1x256xf32>
    %58 = arith.mulf %3, %57 : vector<2x1x256xf32>
    %c0_24 = arith.constant 0 : index
    %c0_25 = arith.constant 0 : index
    %c0_26 = arith.constant 0 : index
    %59 = vector.load %arg7[%c0_24, %c0_25, %c0_26] : memref<2x1x256xf32, #tpu.memory_space<vmem>>, vector<2x1x256xf32>
    tpu.vector_store %arg7[%c0_24, %c0_25, %c0_26], %58 {strides = array<i32>} : memref<2x1x256xf32, #tpu.memory_space<vmem>>, vector<2x1x256xf32>,
    %60 = arith.mulf %41, %51 : vector<2x1x1xf32>
    %61 = vector.broadcast %60 : vector<2x1x1xf32> to vector<2x1x256xf32>
    %62 = arith.mulf %4, %61 : vector<2x1x256xf32>
    %c0_27 = arith.constant 0 : index
    %c0_28 = arith.constant 0 : index
    %c0_29 = arith.constant 0 : index
    %63 = vector.load %arg8[%c0_27, %c0_28, %c0_29] : memref<2x1x256xf32, #tpu.memory_space<vmem>>, vector<2x1x256xf32>
    tpu.vector_store %arg8[%c0_27, %c0_28, %c0_29], %62 {strides = array<i32>} : memref<2x1x256xf32, #tpu.memory_space<vmem>>, vector<2x1x256xf32>,
    %64 = arith.mulf %43, %51 : vector<2x1x1xf32>
    %65 = vector.broadcast %64 : vector<2x1x1xf32> to vector<2x1x256xf32>
    %66 = arith.mulf %5, %65 : vector<2x1x256xf32>
    %c0_30 = arith.constant 0 : index
    %c0_31 = arith.constant 0 : index
    %c0_32 = arith.constant 0 : index
    %67 = vector.load %arg9[%c0_30, %c0_31, %c0_32] : memref<2x1x256xf32, #tpu.memory_space<vmem>>, vector<2x1x256xf32>
    tpu.vector_store %arg9[%c0_30, %c0_31, %c0_32], %66 {strides = array<i32>} : memref<2x1x256xf32, #tpu.memory_space<vmem>>, vector<2x1x256xf32>,
    %68 = arith.mulf %45, %51 : vector<2x1x1xf32>
    %69 = vector.broadcast %68 : vector<2x1x1xf32> to vector<2x1x256xf32>
    %70 = arith.mulf %6, %69 : vector<2x1x256xf32>
    %c0_33 = arith.constant 0 : index
    %c0_34 = arith.constant 0 : index
    %c0_35 = arith.constant 0 : index
    %71 = vector.load %arg10[%c0_33, %c0_34, %c0_35] : memref<2x1x256xf32, #tpu.memory_space<vmem>>, vector<2x1x256xf32>
    tpu.vector_store %arg10[%c0_33, %c0_34, %c0_35], %70 {strides = array<i32>} : memref<2x1x256xf32, #tpu.memory_space<vmem>>, vector<2x1x256xf32>,
    return
  }
}

</mosaic_0001>

<bundles_post_ra>
// kernel: tpu_custom_call.1
= control target key start
LH: loop header
LB: loop body
LE: loop exit
PB: predicated region body
PF: predicated region fallthrough
CT: control target
= control target key end

     0   :  { %16 = vsyncpa [#allocation3], 0  ;;  %s1047_s0 = inlined_call_operand.hbm [shape: f32[1,256], index: 0, kind: input, shape index: {}]   ;;  %s1048_s1 = inlined_call_operand.hbm [shape: f32[2,1,256], index: 1, kind: input, shape index: {}]   ;;  %s1049_s2 = inlined_call_operand.vmem [shape: f32[2,1,256], index: 2, kind: input, shape index: {}]   ;;  %s1050_s3 = inlined_call_operand.vmem [shape: f32[2,1,256], index: 3, kind: input, shape index: {}]   ;;  %s1051_s4 = inlined_call_operand.vmem [shape: f32[2,1,256], index: 4, kind: input, shape index: {}]   ;;  %s1052_s5 = inlined_call_operand.vmem [shape: f32[2,1,256], index: 5, kind: input, shape index: {}]   ;;  %s1053_s6 = inlined_call_operand.hbm [shape: f32[2,1,256], index: 6, kind: output, shape index: {0}]   ;;  %s1054_s7 = inlined_call_operand.hbm [shape: f32[2,1,256], index: 7, kind: output, shape index: {1}]   ;;  %s1055_s8 = inlined_call_operand.hbm [shape: f32[2,1,256], index: 8, kind: output, shape index: {2}]   ;;  %s1056_s9 = inlined_call_operand.hbm [shape: f32[2,1,256], index: 9, kind: output, shape index: {3}]   ;;  %s1057_s10 = inlined_call_operand.hbm [shape: f32[2,1,256], index: 10, kind: output, shape index: {4}]  }
   0x1   :  { %17 = vsyncpa [#allocation6], 0 }
   0x2   :  { %18 = vsyncpa [#allocation4], 0 }
   0x3   :  { %19 = vsyncpa [#allocation9], 0 }
   0x4   :  { %20 = vsyncpa [#allocation12], 0  ;;  %s690_s13 = smov [#allocation2]   ;;  %s691_s15 = smov [#allocation5]  }
   0x5   :  { %s27_s14 = sshll.u32 %s690_s13, 4  ;;  %s36_s16 = sshll.u32 %s691_s15, 4  ;;  %s28_s14 = int_to_ptr.vmem [resolvable:$true] %s27_s14  ;;  %s754_s16 = int_to_ptr.vmem [resolvable:$true] %s36_s16 }
   0x6   :  { %s526_s19 = scalar_lea.hbm %s1047_s0, 32 }
   0x7   :  { %p527_p0 = scmp.ne.s32.totalorder %s1047_s0, %s526_s19  ;;  %p530_p1 = scmp.lt.u32.totalorder %s526_s19, %s1047_s0 }
   0x9   :  { %p532_p2 = pnand %p530_p1, %p527_p0 }
   0xb   :  { %535 = shalt.err (!%p532_p2)
}
   0xc   :  { %s536_s24 = scalar_lea.vmem %s28_s14, 32  ;;  %p541_p4 = scmp.lt.s32.totalorder %s28_s14, %s28_s14 }
   0xd   :  { %p537_p3 = scmp.ne.s32.totalorder %s28_s14, %s536_s24  ;;  %p542_p5 = scmp.lt.s32.totalorder %s536_s24, %s536_s24 }
   0xf   :  { %p543_p6 = por %p542_p5, %p541_p4 }
  0x11   :  { %p544_p7 = pnand %p543_p6, %p537_p3 }
  0x13   :  { %547 = shalt.err (!%p544_p7)
}
  0x14   :  { %30 = dma.hbm_to_vmem [thread:$0]  %s1047_s0, 32, %s28_s14, [#allocation3]  }
  0x15   :  { %s548_s29 = scalar_lea.hbm %s1048_s1, 64 }
  0x16   :  { %p549_p8 = scmp.ne.s32.totalorder %s1048_s1, %s548_s29  ;;  %p552_p9 = scmp.lt.u32.totalorder %s548_s29, %s1048_s1 }
  0x18   :  { %p554_p10 = pnand %p552_p9, %p549_p8 }
  0x1a   :  { %557 = shalt.err (!%p554_p10)
}
  0x1b   :  { %s558_s15 = scalar_lea.vmem %s754_s16, 64  ;;  %p563_p12 = scmp.lt.s32.totalorder %s754_s16, %s754_s16 }
  0x1c   :  { %p559_p11 = scmp.ne.s32.totalorder %s754_s16, %s558_s15  ;;  %p564_p13 = scmp.lt.s32.totalorder %s558_s15, %s558_s15 }
  0x1e   :  { %p565_p0 = por %p564_p13, %p563_p12 }
  0x20   :  { %p566_p1 = pnand %p565_p0, %p559_p11 }
  0x22   :  { %569 = shalt.err (!%p566_p1)
}
  0x23   :  { %s692_s0 = smov 32   ;;  %s693_s14 = smov 2  }
  0x24   :  { %42 = dma.hbm_to_vmem [thread:$0]  %s1048_s1, 64, %s754_s16, [#allocation6], %s692_s0, %s692_s0, %s693_s14  }
  0x25   :  { %680 = dma.done.wait [#allocation3], 32  }
  0x26   :  { %681 = vsyncadd [#allocation3], 4294967264 }
  0x27   :  { %682 = dma.done.wait [#allocation6], 64  }
  0x28   :  { %683 = vsyncadd [#allocation6], 4294967232  ;;  %v791_v0 = vld [vmem:[%s1049_s2] sm:$0x3]  ;;  %v793_v1 = vld [vmem:[#allocation5] sm:$0x3]  ;;  %v74_v4 = vlaneseq }
  0x29   :  { %482 = vtanh.f32 %v791_v0  ;;  %v799_v2 = vld [vmem:[%s1049_s2 + $0x2] sm:$0x3]  ;;  %v801_v3 = vld [vmem:[#allocation5 + $0x2] sm:$0x3]  ;;  %v813_v6 = vld [vmem:[%s1050_s3] sm:$0x3] }
  0x2a   :  { %484 = vtanh.f32 %v793_v1  ;;  %v807_v5 = vld [vmem:[%s1050_s3 + $0x2] sm:$0x3]  ;;  %v825_v8 = vld [vmem:[%s1051_s4] sm:$0x3]  ;;  %v75_v9 = vshrl.u32 %v74_v4, 7  ;;  %vm94_vm0 = vcmask 1040384  }
  0x2b   :  { %486 = vtanh.f32 %v799_v2  ;;  %v819_v7 = vld [vmem:[%s1051_s4 + $0x2] sm:$0x3]  ;;  %v836_v11 = vld [vmem:[#allocation2] sm:$0x3]  ;;  %vm904_vm1 = vcmp.lt.s32.totalorder %v74_v4, 256  ;;  %s695_s11 = smov [#allocation11]  }
  0x2c   :  { %488 = vtanh.f32 %v801_v3  ;;  %v832_v10 = vld [vmem:[%s1052_s5 + $0x2] sm:$0x3]  ;;  %v839_v12 = vsub.s32 0, %v75_v9  ;;  %v841_v13 = vsub.s32 1, %v75_v9  ;;  %v846_v14 = vld [vmem:[%s1052_s5] sm:$0x3] }
  0x2d   :  { %490 = vtanh.f32 %v807_v5  ;;  %s694_s5 = smov [#allocation8]   ;;  %s434_s12 = sshll.u32 %s695_s11, 4  ;;  %s933_s12 = int_to_ptr.vmem [resolvable:$true] %s434_s12 }
  0x2e   :  { %492 = vtanh.f32 %v813_v6  ;;  %s410_s30 = sshll.u32 %s694_s5, 4  ;;  %s696_s13 = smov [#allocation7]   ;;  %s411_s30 = int_to_ptr.vmem [resolvable:$true] %s410_s30 }
  0x2f   :  { %494 = vtanh.f32 %v819_v7  ;;  %s398_s15 = sshll.u32 %s696_s13, 4  ;;  %s697_s17 = smov [#allocation10]   ;;  %s935_s15 = int_to_ptr.vmem [resolvable:$true] %s398_s15 }
  0x30   :  { %496 = vtanh.f32 %v825_v8  ;;  %s422_s18 = sshll.u32 %s697_s17, 4  ;;  %s698_s19 = smov [#allocation13]   ;;  %s944_s18 = int_to_ptr.vmem [resolvable:$true] %s422_s18 }
  0x31   :  { %498 = vtanh.f32 %v832_v10  ;;  %s446_s20 = sshll.u32 %s698_s19, 4  ;;  %s570_s21 = scalar_lea.vmem %s411_s30, 64  ;;  %s948_s20 = int_to_ptr.vmem [resolvable:$true] %s446_s20 }
  0x32   :  { %500 = vtanh.f32 %v846_v14  ;;  %p571_p2 = scmp.ne.s32.totalorder %s411_s30, %s570_s21  ;;  %p575_p3 = scmp.lt.s32.totalorder %s411_s30, %s411_s30 }
  0x33   :  { %v483_v15 = vpop.eup %482  ;;  %p576_p4 = scmp.lt.s32.totalorder %s570_s21, %s570_s21 }
  0x34   :  { %v485_v16 = vpop.eup %484  ;;  %v107_v17 = vmul.f32 %v483_v15, %v836_v11 }
  0x35   :  { %v487_v18 = vpop.eup %486  ;;  %v70_v19 = vmul.f32 %v485_v16, %v836_v11  ;;  %p577_p5 = por %p576_p4, %p575_p3 }
  0x36   :  { %v489_v20 = vpop.eup %488  ;;  %v114_v21 = vrot.slane %v107_v17, %v839_v12  ;;  %v118_v22 = vrot.slane %v107_v17, %v841_v13  ;;  %v108_v23 = vmul.f32 %v487_v18, %v836_v11 }
  0x37   :  { %v491_v24 = vpop.eup %490  ;;  %v77_v25 = vrot.slane %v70_v19, %v839_v12  ;;  %v81_v26 = vrot.slane %v70_v19, %v841_v13  ;;  %v71_v27 = vmul.f32 %v489_v20, %v836_v11  ;;  %p578_p6 = pnand %p577_p5, %p571_p2 }
  0x38   :  { %v493_v28 = vpop.eup %492  ;;  %v131_v29 = vsel %vm94_vm0, %v114_v21, 0.0  ;;  %v132_v30 = vsel %vm94_vm0, %v118_v22, 0.0  ;;  %v122_v31 = vrot.slane %v108_v23, %v839_v12  ;;  %v126_v32 = vrot.slane %v108_v23, %v841_v13 }
  0x39   :  { %v495_v33 = vpop.eup %494  ;;  %v133_v34 = vadd.f32 %v132_v30, %v131_v29  ;;  %v95_v35 = vsel %vm94_vm0, %v77_v25, 0.0  ;;  %v96_v36 = vsel %vm94_vm0, %v81_v26, 0.0  ;;  %v85_v37 = vrot.slane %v71_v27, %v839_v12 }
  0x3a   :  { %v497_v38 = vpop.eup %496  ;;  %v97_v39 = vadd.f32 %v96_v36, %v95_v35  ;;  %v136_v40 = vsel %vm94_vm0, %v122_v31, 0.0  ;;  %v137_v41 = vsel %vm94_vm0, %v126_v32, 0.0  ;;  %v89_v42 = vrot.slane %v71_v27, %v841_v13 }
  0x3b   :  { %v499_v43 = vpop.eup %498  ;;  %134 = vadd.xlane.f32.xlu1 %v133_v34  ;;  %v138_v44 = vadd.f32 %v137_v41, %v136_v40  ;;  %v100_v45 = vsel %vm94_vm0, %v85_v37, 0.0  ;;  %v144_v46 = vmul.f32 %v491_v24, %v836_v11  ;;  %v143_v47 = vmul.f32 %v493_v28, %v836_v11 }
  0x3c   :  { %98 = vadd.xlane.f32.xlu0 %v97_v39  ;;  %v101_v48 = vsel %vm94_vm0, %v89_v42, 0.0  ;;  %v180_v49 = vmul.f32 %v495_v33, %v836_v11  ;;  %v179_v50 = vmul.f32 %v497_v38, %v836_v11  ;;  %v216_v51 = vmul.f32 %v499_v43, %v836_v11  ;;  %v501_v60 = vpop.eup %500 }
  0x3d   :  { %v102_v52 = vadd.f32 %v101_v48, %v100_v45  ;;  %v158_v53 = vrot.slane %v144_v46, %v839_v12  ;;  %v162_v54 = vrot.slane %v144_v46, %v841_v13  ;;  %v150_v55 = vrot.slane %v143_v47, %v839_v12 }
  0x3e   :  { %v154_v56 = vrot.slane %v143_v47, %v841_v13  ;;  %v194_v57 = vrot.slane %v180_v49, %v839_v12  ;;  %v198_v58 = vrot.slane %v180_v49, %v841_v13  ;;  %v186_v59 = vrot.slane %v179_v50, %v839_v12 }
  0x3f   :  { %139 = vadd.xlane.f32.xlu1 %v138_v44  ;;  %v172_v61 = vsel %vm94_vm0, %v158_v53, 0.0  ;;  %v173_v62 = vsel %vm94_vm0, %v162_v54, 0.0  ;;  %v167_v63 = vsel %vm94_vm0, %v150_v55, 0.0  ;;  %v190_v9 = vrot.slane %v179_v50, %v841_v13 }
  0x40   :  { %103 = vadd.xlane.f32.xlu0 %v102_v52  ;;  %v174_v15 = vadd.f32 %v173_v62, %v172_v61  ;;  %v168_v16 = vsel %vm94_vm0, %v154_v56, 0.0  ;;  %v208_v17 = vsel %vm94_vm0, %v194_v57, 0.0  ;;  %v209_v18 = vsel %vm94_vm0, %v198_v58, 0.0 }
  0x41   :  { %v169_v19 = vadd.f32 %v168_v16, %v167_v63  ;;  %v203_v20 = vsel %vm94_vm0, %v186_v59, 0.0  ;;  %v204_v21 = vsel %vm94_vm0, %v190_v9, 0.0  ;;  %v230_v22 = vrot.slane %v216_v51, %v839_v12 }
  0x42   :  { %v234_v23 = vrot.slane %v216_v51, %v841_v13  ;;  %v215_v24 = vmul.f32 %v501_v60, %v836_v11  ;;  %v210_v25 = vadd.f32 %v209_v18, %v208_v17  ;;  %v205_v26 = vadd.f32 %v204_v21, %v203_v20 }
  0x43   :  { %175 = vadd.xlane.f32.xlu1 %v174_v15  ;;  %v244_v27 = vsel %vm94_vm0, %v230_v22, 0.0 }
  0x44   :  { %170 = vadd.xlane.f32.xlu0 %v169_v19  ;;  %v245_v28 = vsel %vm94_vm0, %v234_v23, 0.0  ;;  %v222_v29 = vrot.slane %v215_v24, %v839_v12  ;;  %v226_v30 = vrot.slane %v215_v24, %v841_v13 }
  0x45   :  { %v246_v33 = vadd.f32 %v245_v28, %v244_v27 }
  0x46   :  { %v239_v31 = vsel %vm94_vm0, %v222_v29, 0.0  ;;  %v240_v32 = vsel %vm94_vm0, %v226_v30, 0.0 }
  0x47   :  { %211 = vadd.xlane.f32.xlu1 %v210_v25  ;;  %v241_v11 = vadd.f32 %v240_v32, %v239_v31 }
  0x48   :  { %206 = vadd.xlane.f32.xlu0 %v205_v26 }
  0x4b   :  { %247 = vadd.xlane.f32.xlu1 %v246_v33 }
  0x4c   :  { %242 = vadd.xlane.f32.xlu0 %v241_v11 }
  0xc8   :  { %v135_v34 = vpop.xlane.xlu1 %134 }
  0xc9   :  { %v99_v35 = vpop.xlane.xlu0 %98 }
  0xca   :  { %v249_v41 = vmax.f32 %v99_v35, %v135_v34 }
  0xcc   :  { %v140_v36 = vpop.xlane.xlu1 %139 }
  0xcd   :  { %v104_v37 = vpop.xlane.xlu0 %103 }
  0xce   :  { %v250_v40 = vmax.f32 %v104_v37, %v140_v36 }
  0xd0   :  { %v176_v38 = vpop.xlane.xlu1 %175 }
  0xd1   :  { %v171_v39 = vpop.xlane.xlu0 %170  ;;  %v252_v13 = vmax.f32 %v250_v40, %v176_v38 }
  0xd2   :  { %v251_v44 = vmax.f32 %v249_v41, %v171_v39 }
  0xd4   :  { %v212_v42 = vpop.xlane.xlu1 %211 }
  0xd5   :  { %v207_v43 = vpop.xlane.xlu0 %206  ;;  %v254_v45 = vmax.f32 %v252_v13, %v212_v42 }
  0xd6   :  { %v253_v46 = vmax.f32 %v251_v44, %v207_v43 }
  0xd8   :  { %v248_v47 = vpop.xlane.xlu1 %247 }
  0xd9   :  { %v256_v48 = vmax.f32 %v254_v45, %v248_v47  ;;  %v243_v49 = vpop.xlane.xlu0 %242 }
  0xda   :  { %v255_v50 = vmax.f32 %v253_v46, %v243_v49 }
  0xdb   :  { %v258_v51 = vsub.f32 %v104_v37, %v256_v48  ;;  %v264_v52 = vsub.f32 %v140_v36, %v256_v48  ;;  %v270_v53 = vsub.f32 %v176_v38, %v256_v48  ;;  %v276_v54 = vsub.f32 %v212_v42, %v256_v48 }
  0xdc   :  { %v257_v55 = vsub.f32 %v99_v35, %v255_v50  ;;  %v263_v58 = vsub.f32 %v135_v34, %v255_v50  ;;  %v282_v60 = vsub.f32 %v248_v47, %v256_v48  ;;  %v269_v62 = vsub.f32 %v171_v39, %v255_v50 }
  0xdd   :  { %v261_v56 = vmul.f32 1.442695, %v258_v51  ;;  %v267_v57 = vmul.f32 1.442695, %v264_v52  ;;  %v273_v59 = vmul.f32 1.442695, %v270_v53  ;;  %v275_v15 = vsub.f32 %v207_v43, %v255_v50 }
  0xde   :  { %v279_v61 = vmul.f32 1.442695, %v276_v54  ;;  %v259_v63 = vmul.f32 1.442695, %v257_v55  ;;  %v265_v9 = vmul.f32 1.442695, %v263_v58  ;;  %v281_v18 = vsub.f32 %v243_v49, %v255_v50 }
  0xdf   :  { %502 = vpow2.f32 %v261_v56  ;;  %v285_v16 = vmul.f32 1.442695, %v282_v60  ;;  %v271_v17 = vmul.f32 1.442695, %v269_v62  ;;  %v277_v19 = vmul.f32 1.442695, %v275_v15 }
  0xe0   :  { %504 = vpow2.f32 %v267_v57  ;;  %v283_v20 = vmul.f32 1.442695, %v281_v18 }
  0xe1   :  { %506 = vpow2.f32 %v273_v59 }
  0xe2   :  { %508 = vpow2.f32 %v279_v61 }
  0xe3   :  { %510 = vpow2.f32 %v259_v63 }
  0xe4   :  { %512 = vpow2.f32 %v265_v9 }
  0xe5   :  { %514 = vpow2.f32 %v285_v16 }
  0xe6   :  { %516 = vpow2.f32 %v271_v17 }
  0xe7   :  { %518 = vpow2.f32 %v277_v19 }
  0xe8   :  { %520 = vpow2.f32 %v283_v20 }
  0xe9   :  { %v503_v21 = vpop.eup %502 }
  0xea   :  { %v505_v22 = vpop.eup %504 }
  0xeb   :  { %v288_v23 = vadd.f32 %v505_v22, %v503_v21  ;;  %v507_v24 = vpop.eup %506 }
  0xec   :  { %v509_v25 = vpop.eup %508 }
  0xed   :  { %v290_v26 = vadd.f32 %v507_v24, %v288_v23  ;;  %v511_v27 = vpop.eup %510 }
  0xee   :  { %v513_v28 = vpop.eup %512 }
  0xef   :  { %v292_v29 = vadd.f32 %v509_v25, %v290_v26  ;;  %v515_v30 = vpop.eup %514  ;;  %v287_v31 = vadd.f32 %v513_v28, %v511_v27 }
  0xf0   :  { %v517_v32 = vpop.eup %516 }
  0xf1   :  { %v294_v33 = vadd.f32 %v515_v30, %v292_v29  ;;  %v289_v11 = vadd.f32 %v517_v32, %v287_v31  ;;  %v519_v34 = vpop.eup %518 }
  0xf2   :  { %v521_v36 = vpop.eup %520 }
  0xf3   :  { %522 = vrcp.f32 %v294_v33  ;;  %v291_v35 = vadd.f32 %v519_v34, %v289_v11 }
  0xf5   :  { %v293_v37 = vadd.f32 %v521_v36, %v291_v35 }
  0xf7   :  { %524 = vrcp.f32 %v293_v37 }
  0xfd   :  { %v523_v38 = vpop.eup %522 }
  0xfe   :  { %v376_v39 = vmul.f32 %v523_v38, %v515_v30  ;;  %v322_v40 = vmul.f32 %v523_v38, %v505_v22  ;;  %v358_v41 = vmul.f32 %v523_v38, %v509_v25  ;;  %v300_v42 = vmul.f32 %v523_v38, %v503_v21 }
  0xff   :  { %v340_v13 = vmul.f32 %v523_v38, %v507_v24 }
 0x100   :  { %v332_v43 = vrot.slane %v322_v40, %v839_v12  ;;  %v368_v44 = vrot.slane %v358_v41, %v839_v12  ;;  %v310_v45 = vrot.slane %v300_v42, %v839_v12  ;;  %v386_v46 = vrot.slane %v376_v39, %v839_v12 }
 0x101   :  { %v350_v48 = vrot.slane %v340_v13, %v839_v12  ;;  %v525_v49 = vpop.eup %524 }
 0x102   :  { %v336_v50 = vmul.f32 %v332_v43, %v799_v2  ;;  %v372_v51 = vmul.f32 %v368_v44, %v819_v7  ;;  %v314_v52 = vmul.f32 %v310_v45, %v801_v3  ;;  %v390_v53 = vmul.f32 %v386_v46, %v832_v10 }
 0x103   :  { %v375_v54 = vmul.f32 %v525_v49, %v521_v36  ;;  %v321_v55 = vmul.f32 %v525_v49, %v513_v28  ;;  %v357_v56 = vmul.f32 %v525_v49, %v519_v34  ;;  %v299_v57 = vmul.f32 %v525_v49, %v511_v27 }
 0x104   :  { %338 = vst.msk [vmem:[#allocation8 + $0x2] sm:$0x3] %vm904_vm1, %v336_v50  ;;  %374 = vst.msk [vmem:[#allocation11 + $0x2] sm:$0x3] %vm904_vm1, %v372_v51  ;;  %v339_v2 = vmul.f32 %v525_v49, %v517_v32  ;;  %v354_v3 = vmul.f32 %v350_v48, %v807_v5 }
 0x105   :  { %320 = vst.msk [vmem:[#allocation7 + $0x2] sm:$0x3] %vm904_vm1, %v314_v52  ;;  %392 = vst.msk [vmem:[#allocation13 + $0x2] sm:$0x3] %vm904_vm1, %v390_v53  ;;  %v328_v4 = vrot.slane %v321_v55, %v839_v12  ;;  %v364_v7 = vrot.slane %v357_v56, %v839_v12  ;;  %v306_v10 = vrot.slane %v299_v57, %v839_v12 }
 0x106   :  { %v382_v58 = vrot.slane %v375_v54, %v839_v12  ;;  %v346_v59 = vrot.slane %v339_v2, %v839_v12  ;;  %356 = vst.msk [vmem:[#allocation10 + $0x2] sm:$0x3] %vm904_vm1, %v354_v3 }
 0x107   :  { %v335_v5 = vmul.f32 %v328_v4, %v791_v0  ;;  %v371_v60 = vmul.f32 %v364_v7, %v825_v8  ;;  %v313_v61 = vmul.f32 %v306_v10, %v793_v1 }
 0x108   :  { %v389_v62 = vmul.f32 %v382_v58, %v846_v14  ;;  %v353_v12 = vmul.f32 %v346_v59, %v813_v6 }
 0x109   :  { %337 = vst.msk [vmem:[#allocation8] sm:$0x3] %vm904_vm1, %v335_v5  ;;  %373 = vst.msk [vmem:[#allocation11] sm:$0x3] %vm904_vm1, %v371_v60 }
 0x10a   :  { %319 = vst.msk [vmem:[#allocation7] sm:$0x3] %vm904_vm1, %v313_v61  ;;  %391 = vst.msk [vmem:[#allocation13] sm:$0x3] %vm904_vm1, %v389_v62 }
 0x10b   :  { %581 = shalt.err (!%p578_p6)
}
 0x10c   :  { %s582_s16 = scalar_lea.hbm %s1054_s7, 64 }
 0x10d   :  { %p583_p7 = scmp.ne.s32.totalorder %s1054_s7, %s582_s16  ;;  %p586_p8 = scmp.lt.u32.totalorder %s582_s16, %s1054_s7 }
 0x10f   :  { %p588_p9 = pnand %p586_p8, %p583_p7 }
 0x111   :  { %591 = shalt.err (!%p588_p9)
}
 0x112   :  { %416 = dma.vmem_to_hbm [thread:$0]  %s411_s30, 64, %s1054_s7, [#allocation9], %s692_s0, %s692_s0, %s693_s14   ;;  %355 = vst.msk [vmem:[#allocation10] sm:$0x3] %vm904_vm1, %v353_v12 }
 0x113   :  { %s592_s3 = scalar_lea.vmem %s933_s12, 64  ;;  %p597_p11 = scmp.lt.s32.totalorder %s933_s12, %s933_s12 }
 0x114   :  { %p593_p10 = scmp.ne.s32.totalorder %s933_s12, %s592_s3  ;;  %p598_p12 = scmp.lt.s32.totalorder %s592_s3, %s592_s3 }
 0x116   :  { %p599_p13 = por %p598_p12, %p597_p11 }
 0x118   :  { %p600_p0 = pnand %p599_p13, %p593_p10 }
 0x11a   :  { %603 = shalt.err (!%p600_p0)
}
 0x11b   :  { %s604_s29 = scalar_lea.hbm %s1056_s9, 64 }
 0x11c   :  { %p605_p1 = scmp.ne.s32.totalorder %s1056_s9, %s604_s29  ;;  %p608_p2 = scmp.lt.u32.totalorder %s604_s29, %s1056_s9 }
 0x11e   :  { %p610_p3 = pnand %p608_p2, %p605_p1 }
 0x120   :  { %613 = shalt.err (!%p610_p3)
}
 0x121   :  { %440 = dma.vmem_to_hbm [thread:$0]  %s933_s12, 64, %s1056_s9, [#allocation12], %s692_s0, %s692_s0, %s693_s14  }
 0x122   :  { %s614_s19 = scalar_lea.vmem %s935_s15, 64  ;;  %p619_p5 = scmp.lt.s32.totalorder %s935_s15, %s935_s15 }
 0x123   :  { %p615_p4 = scmp.ne.s32.totalorder %s935_s15, %s614_s19  ;;  %p620_p6 = scmp.lt.s32.totalorder %s614_s19, %s614_s19 }
 0x125   :  { %p621_p7 = por %p620_p6, %p619_p5 }
 0x127   :  { %p622_p8 = pnand %p621_p7, %p615_p4 }
 0x129   :  { %625 = shalt.err (!%p622_p8)
}
 0x12a   :  { %s626_s1 = scalar_lea.hbm %s1053_s6, 64 }
 0x12b   :  { %p627_p9 = scmp.ne.s32.totalorder %s1053_s6, %s626_s1  ;;  %p630_p10 = scmp.lt.u32.totalorder %s626_s1, %s1053_s6 }
 0x12d   :  { %p632_p11 = pnand %p630_p10, %p627_p9 }
 0x12f   :  { %635 = shalt.err (!%p632_p11)
}
 0x130   :  { %404 = dma.vmem_to_hbm [thread:$0]  %s935_s15, 64, %s1053_s6, [#allocation4], %s692_s0, %s692_s0, %s693_s14  }
 0x131   :  { %s636_s25 = scalar_lea.vmem %s944_s18, 64  ;;  %p641_p13 = scmp.lt.s32.totalorder %s944_s18, %s944_s18 }
 0x132   :  { %p637_p12 = scmp.ne.s32.totalorder %s944_s18, %s636_s25  ;;  %p642_p0 = scmp.lt.s32.totalorder %s636_s25, %s636_s25 }
 0x134   :  { %p643_p1 = por %p642_p0, %p641_p13 }
 0x136   :  { %p644_p2 = pnand %p643_p1, %p637_p12 }
 0x138   :  { %647 = shalt.err (!%p644_p2)
}
 0x139   :  { %s648_s3 = scalar_lea.hbm %s1055_s8, 64 }
 0x13a   :  { %p649_p3 = scmp.ne.s32.totalorder %s1055_s8, %s648_s3  ;;  %p652_p4 = scmp.lt.u32.totalorder %s648_s3, %s1055_s8 }
 0x13c   :  { %p654_p5 = pnand %p652_p4, %p649_p3 }
 0x13e   :  { %657 = shalt.err (!%p654_p5)
}
 0x13f   :  { %428 = dma.vmem_to_hbm [thread:$0]  %s944_s18, 64, %s1055_s8, [#allocation9], %s692_s0, %s692_s0, %s693_s14  }
 0x140   :  { %s658_s11 = scalar_lea.vmem %s948_s20, 64  ;;  %p663_p7 = scmp.lt.s32.totalorder %s948_s20, %s948_s20 }
 0x141   :  { %p659_p6 = scmp.ne.s32.totalorder %s948_s20, %s658_s11  ;;  %p664_p8 = scmp.lt.s32.totalorder %s658_s11, %s658_s11 }
 0x143   :  { %p665_p9 = por %p664_p8, %p663_p7 }
 0x145   :  { %p666_p10 = pnand %p665_p9, %p659_p6 }
 0x147   :  { %669 = shalt.err (!%p666_p10)
}
 0x148   :  { %s670_s13 = scalar_lea.hbm %s1057_s10, 64 }
 0x149   :  { %p671_p11 = scmp.ne.s32.totalorder %s1057_s10, %s670_s13  ;;  %p674_p12 = scmp.lt.u32.totalorder %s670_s13, %s1057_s10 }
 0x14b   :  { %p676_p13 = pnand %p674_p12, %p671_p11 }
 0x14d   :  { %679 = shalt.err (!%p676_p13)
}
 0x14e   :  { %452 = dma.vmem_to_hbm [thread:$0]  %s948_s20, 64, %s1057_s10, [#allocation12], %s692_s0, %s692_s0, %s693_s14  }
 0x14f   :  { %684 = dma.done.wait [#allocation4], 64  }
 0x150   :  { %685 = vsyncadd [#allocation4], 4294967232 }
 0x151   :  { %686 = dma.done.wait [#allocation9], 128  }
 0x152   :  { %687 = vsyncadd [#allocation9], 4294967168 }
 0x153   :  { %688 = dma.done.wait [#allocation12], 128  }
 0x154   :  { %689 = vsyncadd [#allocation12], 4294967168 }
 0x155   :  { %468 = vsyncpa [#allocation3], 1 }
 0x156   :  { %469 = vsyncpa [#allocation6], 1 }
 0x157   :  { %470 = vsyncpa [#allocation4], 1 }
 0x158   :  { %471 = vsyncpa [#allocation9], 1 }
 0x159   :  { %472 = vsyncpa [#allocation12], 1 }

</bundles_post_ra>
